<compile_context>
chip_gen: v6e
topology: v6e:2x2x1
jax: 0.10.0
libtpu: 0.0.40
codegen_flags: <defaults>
</compile_context>

<pallas_src>
import functools

import jax
import jax.numpy as jnp
from jax.experimental import pallas as pl
from jax.experimental.pallas import tpu as pltpu

EPS = 1e-5  # nn.BatchNorm2d default eps


# ----------------------------------------------------------------------------- kernel --
def _conv_bn_relu_stage(x2d, m_ref, sel_ref, selt_ref, g_ref, beta_ref, s_dn, s_up, count):
    """One Conv2d(3x3, pad=1) + BatchNorm2d(batch stats) + ReLU in slab layout.

    x2d        : (N*H, W*Cin)       bf16 activation slab (lane = w*Cin + ci)
    m_ref      : (3, W*Cin, W*Cout) bf16 per-ky block-banded conv matrices
                 (kx taps and the W padding folded into the contraction)
    sel_ref    : (W*Cout, Cout) f32  0/1 lane->channel map (BN stats, kept f32)
    selt_ref   : (Cout, W*Cout) bf16 0/1 channel->lane map (affine broadcast)
    g_ref/beta_ref : (1, Cout) f32   BN affine parameters
    s_dn/s_up  : (N*H, N*H) bf16     0/1 "row h-1 / h+1 of the same image" matrices
    returns    : (N*H, W*Cout) f32   activation slab
    """
    # ky = 0 / 2 tap sources via tiny MXU matmuls (fused zero padding in H; exact copies).
    x_dn = jnp.dot(s_dn, x2d, preferred_element_type=jnp.float32).astype(jnp.bfloat16)
    x_up = jnp.dot(s_up, x2d, preferred_element_type=jnp.float32).astype(jnp.bfloat16)

    # Whole 3x3 conv (incl. padding in W) = 3 bf16 MXU matmuls, f32 accumulation.
    y = jnp.dot(x2d, m_ref[1], preferred_element_type=jnp.float32)          # ky = 1
    y += jnp.dot(x_dn, m_ref[0], preferred_element_type=jnp.float32)        # ky = 0
    y += jnp.dot(x_up, m_ref[2], preferred_element_type=jnp.float32)        # ky = 2
    # y: (N*H, W*Cout)

    # BatchNorm2d (training mode): one-pass per-channel sum / sum-of-squares in f32.
    # TODO(synk): use two-pass / Welford accumulation in the tiled large-shape version.
    r1 = jnp.sum(y, axis=0, keepdims=True)                                   # (1, W*Cout)
    r2 = jnp.sum(y * y, axis=0, keepdims=True)
    mean = jnp.dot(r1, sel_ref[...], preferred_element_type=jnp.float32) / count  # (1, Cout)
    ex2 = jnp.dot(r2, sel_ref[...], preferred_element_type=jnp.float32) / count
    var = jnp.maximum(ex2 - mean * mean, 0.0)        # biased variance (PyTorch train mode)
    scale = g_ref[...] * jax.lax.rsqrt(var + EPS)
    # NOTE: conv bias is omitted on purpose: a per-channel constant added before
    # train-mode BN is exactly removed by the mean subtraction.
    shift = beta_ref[...] - mean * scale

    # Broadcast per-channel scale/shift back to lanes with bf16 0/1-selector dots;
    # the affine + ReLU then run lane-dense on full vregs.
    scale_l = jnp.dot(scale.astype(jnp.bfloat16), selt_ref[...],
                      preferred_element_type=jnp.float32)                    # (1, W*Cout)
    shift_l = jnp.dot(shift.astype(jnp.bfloat16), selt_ref[...],
                      preferred_element_type=jnp.float32)
    return jnp.maximum(y * scale_l + shift_l, 0.0)


def _double_conv_kernel(x_ref, m1_ref, m2_ref, g1_ref, b1_ref, g2_ref, b2_ref,
                        sel_ref, selt_ref, o_ref, *, H, count):
    nh = x_ref.shape[0]
    # 0/1 shift-and-mask matrices: select row h-1 / h+1 of the SAME image (zero otherwise),
    # i.e. padding=1 in H plus the image boundaries inside the (N*H) slab, built once and
    # shared by both conv stages.
    r = jax.lax.broadcasted_iota(jnp.int32, (nh, nh), 0)
    c = jax.lax.broadcasted_iota(jnp.int32, (nh, nh), 1)
    s_dn = ((c == r - 1) & (r % H != 0)).astype(jnp.bfloat16)        # source row h-1
    s_up = ((c == r + 1) & (r % H != H - 1)).astype(jnp.bfloat16)    # source row h+1

    a1 = _conv_bn_relu_stage(x_ref[...], m1_ref, sel_ref, selt_ref, g1_ref, b1_ref,
                             s_dn, s_up, count)
    # Stage-1 activation never leaves VMEM; feed stage 2 in bf16.
    o_ref[...] = _conv_bn_relu_stage(a1.astype(jnp.bfloat16), m2_ref, sel_ref, selt_ref,
                                     g2_ref, b2_ref, s_dn, s_up, count)


# ---------------------------------------------------------------------------- wrapper --
def _conv_ky_matrices(w_hwio, W):
    """Fold a (3, 3, Cin, Cout) kernel into per-ky block-banded (W*Cin, W*Cout) matrices
    M[ky][wp*Cin + ci, w*Cout + co] = w[ky, wp - w + 1, ci, co] inside the band, so that
    conv3x3(pad=1) == sum_ky row_shift_ky(x_slab) @ M[ky] in the (N*H, W*C) slab layout.

    TODO(synk): this banded matrix is O(W^2*Cin*Cout) with only ~3/W nonzero; for UNet-scale
    W (or Cout >= 128) switch to channels-minor im2col ((rows, 9*Cin) @ (9*Cin, Cout)) so the
    weight is dense and O(Cin*Cout), and re-derive tiling against v7x's 64 MiB VMEM."""
    KH, KW, Cin, Cout = w_hwio.shape
    wp = jnp.arange(W)[None, :, None]                    # source column w'
    wo = jnp.arange(W)[None, None, :]                    # output column w
    kx = jnp.arange(KW)[:, None, None]
    band = (wp == wo + kx - 1).astype(w_hwio.dtype)      # (KW, W, W): kx = wp - w + 1
    # FIXED: output axes "...wo" -> (KH, W, Cin, W, Cout); previously "...ow" permuted cols.
    m = jnp.einsum("xpw,yxio->ypiwo", band, w_hwio)
    return m.reshape(KH, W * Cin, W * Cout)


def prepare_params(params, W):
    """One-time precompute of everything the kernel consumes (hoisted out of the forward
    path per the performance review): bf16 banded conv matrices, 0/1 lane<->channel maps,
    and f32 BN affine rows."""
    Cout = params["g1"].shape[0]
    lane_is_c = jnp.arange(W * Cout)[:, None] % Cout == jnp.arange(Cout)[None, :]
    sel = lane_is_c.astype(jnp.float32)                               # (W*Cout, Cout)
    return {
        "m1": _conv_ky_matrices(params["w1"], W).astype(jnp.bfloat16),  # (3, W*Cin,  W*Cout)
        "m2": _conv_ky_matrices(params["w2"], W).astype(jnp.bfloat16),  # (3, W*Cout, W*Cout)
        "sel": sel,                                                     # f32 for BN stats
        "selt": sel.T.astype(jnp.bfloat16),                             # (Cout, W*Cout)
        "g1": params["g1"].reshape(1, Cout).astype(jnp.float32),
        "beta1": params["beta1"].reshape(1, Cout).astype(jnp.float32),
        "g2": params["g2"].reshape(1, Cout).astype(jnp.float32),
        "beta2": params["beta2"].reshape(1, Cout).astype(jnp.float32),
        # params["b1"] / params["b2"] (conv biases) are intentionally unused: train-mode BN
        # cancels any per-channel constant added before it.
    }


def double_conv_nhwc(x_nhwc, prep):
    """Fused DoubleConv on an NHWC input (native entry point: no layout transposes)."""
    N, H, W, Cin = x_nhwc.shape
    Cout = prep["g1"].shape[1]
    nh = N * H

    # Lane-dense slab (layout-free reshape); bf16 halves the input DMA bytes.
    x2d = x_nhwc.reshape(nh, W * Cin).astype(jnp.bfloat16)

    kernel = functools.partial(_double_conv_kernel, H=H, count=float(N * H * W))
    vmem = pl.BlockSpec(memory_space=pltpu.MemorySpace.VMEM)

    flops = (2 * nh * (3 * W * Cin) * (W * Cout)      # conv 1
             + 2 * nh * (3 * W * Cout) * (W * Cout)   # conv 2
             + 4 * 2 * nh * nh * W * Cout)            # row-shift matmuls (upper bound)
    bytes_accessed = (x2d.size * 2 + prep["m1"].size * 2 + prep["m2"].size * 2
                      + prep["sel"].size * 4 + prep["selt"].size * 2
                      + 4 * Cout * 4 + nh * W * Cout * 4)

    out2d = pl.pallas_call(
        kernel,
        out_shape=jax.ShapeDtypeStruct((nh, W * Cout), jnp.float32),
        in_specs=[vmem] * 9,
        out_specs=vmem,
        compiler_params=pltpu.CompilerParams(vmem_limit_bytes=32 * 1024 * 1024),
        cost_estimate=pl.CostEstimate(flops=int(flops), transcendentals=2 * Cout,
                                      bytes_accessed=int(bytes_accessed)),
    )(x2d, prep["m1"], prep["m2"], prep["g1"], prep["beta1"], prep["g2"], prep["beta2"],
      prep["sel"], prep["selt"])

    return out2d.reshape(N, H, W, Cout)


def double_conv(x_nchw, prep):
    """NCHW wrapper matching the PyTorch module API.  Prefer double_conv_nhwc: each
    transpose here is an extra full-tensor HBM pass outside the kernel."""
    y = double_conv_nhwc(jnp.transpose(x_nchw, (0, 2, 3, 1)), prep)
    return jnp.transpose(y, (0, 3, 1, 2))


# ------------------------------------------------------------------- params & reference --
def init_params(key, in_ch, out_ch):
    ks = jax.random.split(key, 8)
    s1 = 1.0 / jnp.sqrt(in_ch * 9.0)
    s2 = 1.0 / jnp.sqrt(out_ch * 9.0)
    # Conv weights created in PyTorch OIHW layout, transposed to HWIO for the kernel prep.
    w1_oihw = jax.random.uniform(ks[0], (out_ch, in_ch, 3, 3), jnp.float32, -s1, s1)
    w2_oihw = jax.random.uniform(ks[1], (out_ch, out_ch, 3, 3), jnp.float32, -s2, s2)
    return {
        "w1": jnp.transpose(w1_oihw, (2, 3, 1, 0)),
        "b1": jax.random.uniform(ks[2], (out_ch,), jnp.float32, -s1, s1),
        "g1": 1.0 + 0.1 * jax.random.normal(ks[3], (out_ch,), jnp.float32),
        "beta1": 0.1 * jax.random.normal(ks[4], (out_ch,), jnp.float32),
        "w2": jnp.transpose(w2_oihw, (2, 3, 1, 0)),
        "b2": jax.random.uniform(ks[5], (out_ch,), jnp.float32, -s2, s2),
        "g2": 1.0 + 0.1 * jax.random.normal(ks[6], (out_ch,), jnp.float32),
        "beta2": 0.1 * jax.random.normal(ks[7], (out_ch,), jnp.float32),
    }


def _reference(x_nchw, params):
    """Pure-JAX reference mirroring PyTorch semantics (NCHW, train-mode BN, with conv bias)."""
    def conv(x, w_hwio, b):
        w_oihw = jnp.transpose(w_hwio, (3, 2, 0, 1))
        y = jax.lax.conv_general_dilated(
            x, w_oihw, window_strides=(1, 1), padding=((1, 1), (1, 1)),
            dimension_numbers=("NCHW", "OIHW", "NCHW"))
        return y + b[None, :, None, None]

    def bn_relu(y, g, beta):
        mean = jnp.mean(y, axis=(0, 2, 3), keepdims=True)
        var = jnp.mean(jnp.square(y - mean), axis=(0, 2, 3), keepdims=True)
        y = (y - mean) * jax.lax.rsqrt(var + EPS)
        y = y * g[None, :, None, None] + beta[None, :, None, None]
        return jnp.maximum(y, 0.0)

    y = bn_relu(conv(x_nchw, params["w1"], params["b1"]), params["g1"], params["beta1"])
    y = bn_relu(conv(y, params["w2"], params["b2"]), params["g2"], params["beta2"])
    return y


if __name__ == "__main__":
    key = jax.random.PRNGKey(0)
    k_x, k_p = jax.random.split(key)

    N, IN_CH, OUT_CH, H, W = 2, 4, 8, 16, 16
    x = jax.random.normal(k_x, (N, IN_CH, H, W), jnp.float32)
    params = init_params(k_p, IN_CH, OUT_CH)
    prep = prepare_params(params, W)   # one-time weight / selector precompute (hoisted)

    out = jax.block_until_ready(double_conv(x, prep))
    ref = jax.block_until_ready(_reference(x, params))

    assert out.shape == (N, OUT_CH, H, W), out.shape
    max_err = float(jnp.max(jnp.abs(out - ref)))
    # bf16 MXU operands in both conv stages -> looser tolerance than a pure-f32 pipeline.
    assert jnp.allclose(out, ref, atol=5e-2, rtol=5e-2), max_err

    print("KERNEL_OK")
</pallas_src>

<mosaic_0001>
module attributes {stable_mosaic.version = 11 : i64} {
  func.func @_double_conv_kernel(%arg0: memref<32x64xbf16, #tpu.memory_space<vmem>>, %arg1: memref<3x64x128xbf16, #tpu.memory_space<vmem>>, %arg2: memref<3x128x128xbf16, #tpu.memory_space<vmem>>, %arg3: memref<1x8xf32, #tpu.memory_space<vmem>>, %arg4: memref<1x8xf32, #tpu.memory_space<vmem>>, %arg5: memref<1x8xf32, #tpu.memory_space<vmem>>, %arg6: memref<1x8xf32, #tpu.memory_space<vmem>>, %arg7: memref<128x8xf32, #tpu.memory_space<vmem>>, %arg8: memref<8x128xbf16, #tpu.memory_space<vmem>>, %arg9: memref<32x128xf32, #tpu.memory_space<vmem>>) attributes {dimension_semantics = [], scalar_prefetch = 0 : i64, scratch_operands = 0 : i64, tpu.core_type = #tpu.core_type<tc>} {
    %0 = tpu.iota {dimensions = array<i32: 0>} : vector<32x32xi32>
    %1 = tpu.iota {dimensions = array<i32: 1>} : vector<32x32xi32>
    %c1_i32 = arith.constant 1 : i32
    %2 = vector.broadcast %c1_i32 : i32 to vector<32x32xi32>
    %3 = arith.subi %0, %2 : vector<32x32xi32>
    %4 = arith.cmpi eq, %1, %3 : vector<32x32xi32>
    %c16_i32 = arith.constant 16 : i32
    %c0_i32 = arith.constant 0 : i32
    %5 = arith.cmpi eq, %c16_i32, %c0_i32 : i32
    %c1_i32_0 = arith.constant 1 : i32
    %6 = arith.select %5, %c1_i32_0, %c16_i32 : i32
    %7 = vector.broadcast %6 : i32 to vector<32x32xi32>
    %8 = arith.remsi %0, %7 : vector<32x32xi32>
    %c0_i32_1 = arith.constant 0 : i32
    %9 = vector.broadcast %c0_i32_1 : i32 to vector<32x32xi32>
    %10 = arith.cmpi ne, %8, %9 : vector<32x32xi32>
    %c0_i32_2 = arith.constant 0 : i32
    %11 = vector.broadcast %c0_i32_2 : i32 to vector<32x32xi32>
    %12 = arith.cmpi slt, %8, %11 : vector<32x32xi32>
    %c0_i32_3 = arith.constant 0 : i32
    %13 = arith.cmpi slt, %6, %c0_i32_3 : i32
    %14 = vector.broadcast %13 : i1 to vector<32x32xi1>
    %15 = vector.broadcast %14 : vector<32x32xi1> to vector<32x32xi1>
    %16 = arith.xori %12, %15 : vector<32x32xi1>
    %17 = arith.andi %16, %10 : vector<32x32xi1>
    %18 = vector.broadcast %6 : i32 to vector<32x32xi32>
    %19 = arith.addi %8, %18 : vector<32x32xi32>
    %20 = arith.select %17, %19, %8 : vector<32x32xi1>, vector<32x32xi32>
    %c0_i32_4 = arith.constant 0 : i32
    %21 = vector.broadcast %c0_i32_4 : i32 to vector<32x32xi32>
    %22 = arith.cmpi ne, %20, %21 : vector<32x32xi32>
    %23 = arith.andi %4, %22 : vector<32x32xi1>
    %24 = arith.extui %23 : vector<32x32xi1> to vector<32x32xi32>
    %25 = arith.sitofp %24 : vector<32x32xi32> to vector<32x32xf32>
    %26 = arith.truncf %25 : vector<32x32xf32> to vector<32x32xbf16>
    %c1_i32_5 = arith.constant 1 : i32
    %27 = vector.broadcast %c1_i32_5 : i32 to vector<32x32xi32>
    %28 = arith.addi %0, %27 : vector<32x32xi32>
    %29 = arith.cmpi eq, %1, %28 : vector<32x32xi32>
    %c16_i32_6 = arith.constant 16 : i32
    %c0_i32_7 = arith.constant 0 : i32
    %30 = arith.cmpi eq, %c16_i32_6, %c0_i32_7 : i32
    %c1_i32_8 = arith.constant 1 : i32
    %31 = arith.select %30, %c1_i32_8, %c16_i32_6 : i32
    %32 = vector.broadcast %31 : i32 to vector<32x32xi32>
    %33 = arith.remsi %0, %32 : vector<32x32xi32>
    %c0_i32_9 = arith.constant 0 : i32
    %34 = vector.broadcast %c0_i32_9 : i32 to vector<32x32xi32>
    %35 = arith.cmpi ne, %33, %34 : vector<32x32xi32>
    %c0_i32_10 = arith.constant 0 : i32
    %36 = vector.broadcast %c0_i32_10 : i32 to vector<32x32xi32>
    %37 = arith.cmpi slt, %33, %36 : vector<32x32xi32>
    %c0_i32_11 = arith.constant 0 : i32
    %38 = arith.cmpi slt, %31, %c0_i32_11 : i32
    %39 = vector.broadcast %38 : i1 to vector<32x32xi1>
    %40 = vector.broadcast %39 : vector<32x32xi1> to vector<32x32xi1>
    %41 = arith.xori %37, %40 : vector<32x32xi1>
    %42 = arith.andi %41, %35 : vector<32x32xi1>
    %43 = vector.broadcast %31 : i32 to vector<32x32xi32>
    %44 = arith.addi %33, %43 : vector<32x32xi32>
    %45 = arith.select %42, %44, %33 : vector<32x32xi1>, vector<32x32xi32>
    %c15_i32 = arith.constant 15 : i32
    %46 = vector.broadcast %c15_i32 : i32 to vector<32x32xi32>
    %47 = arith.cmpi ne, %45, %46 : vector<32x32xi32>
    %48 = arith.andi %29, %47 : vector<32x32xi1>
    %49 = arith.extui %48 : vector<32x32xi1> to vector<32x32xi32>
    %50 = arith.sitofp %49 : vector<32x32xi32> to vector<32x32xf32>
    %51 = arith.truncf %50 : vector<32x32xf32> to vector<32x32xbf16>
    %c0 = arith.constant 0 : index
    %c0_12 = arith.constant 0 : index
    %52 = vector.load %arg0[%c0, %c0_12] : memref<32x64xbf16, #tpu.memory_space<vmem>>, vector<32x64xbf16>
    %cst = arith.constant dense<0.000000e+00> : vector<32x64xf32>
    %53 = tpu.matmul %26, %52, %cst {dimension_numbers = #tpu.dot_dimension_numbers<[1], [0], [0], [1], [0, 0, 1, 1], [], []>} : vector<32x32xbf16>, vector<32x64xbf16>, vector<32x64xf32> -> vector<32x64xf32>
    %54 = arith.truncf %53 : vector<32x64xf32> to vector<32x64xbf16>
    %cst_13 = arith.constant dense<0.000000e+00> : vector<32x64xf32>
    %55 = tpu.matmul %51, %52, %cst_13 {dimension_numbers = #tpu.dot_dimension_numbers<[1], [0], [0], [1], [0, 0, 1, 1], [], []>} : vector<32x32xbf16>, vector<32x64xbf16>, vector<32x64xf32> -> vector<32x64xf32>
    %56 = arith.truncf %55 : vector<32x64xf32> to vector<32x64xbf16>
    %c1 = arith.constant 1 : index
    %c0_14 = arith.constant 0 : index
    %c0_15 = arith.constant 0 : index
    %57 = vector.load %arg1[%c1, %c0_14, %c0_15] : memref<3x64x128xbf16, #tpu.memory_space<vmem>>, vector<1x64x128xbf16>
    %58 = vector.shape_cast %57 : vector<1x64x128xbf16> to vector<64x128xbf16>
    %cst_16 = arith.constant dense<0.000000e+00> : vector<32x128xf32>
    %59 = tpu.matmul %52, %58, %cst_16 {dimension_numbers = #tpu.dot_dimension_numbers<[1], [0], [0], [1], [0, 0, 1, 1], [], []>} : vector<32x64xbf16>, vector<64x128xbf16>, vector<32x128xf32> -> vector<32x128xf32>
    %c0_17 = arith.constant 0 : index
    %c0_18 = arith.constant 0 : index
    %c0_19 = arith.constant 0 : index
    %60 = vector.load %arg1[%c0_17, %c0_18, %c0_19] : memref<3x64x128xbf16, #tpu.memory_space<vmem>>, vector<1x64x128xbf16>
    %61 = vector.shape_cast %60 : vector<1x64x128xbf16> to vector<64x128xbf16>
    %cst_20 = arith.constant dense<0.000000e+00> : vector<32x128xf32>
    %62 = tpu.matmul %54, %61, %cst_20 {dimension_numbers = #tpu.dot_dimension_numbers<[1], [0], [0], [1], [0, 0, 1, 1], [], []>} : vector<32x64xbf16>, vector<64x128xbf16>, vector<32x128xf32> -> vector<32x128xf32>
    %63 = arith.addf %59, %62 : vector<32x128xf32>
    %c2 = arith.constant 2 : index
    %c0_21 = arith.constant 0 : index
    %c0_22 = arith.constant 0 : index
    %64 = vector.load %arg1[%c2, %c0_21, %c0_22] : memref<3x64x128xbf16, #tpu.memory_space<vmem>>, vector<1x64x128xbf16>
    %65 = vector.shape_cast %64 : vector<1x64x128xbf16> to vector<64x128xbf16>
    %cst_23 = arith.constant dense<0.000000e+00> : vector<32x128xf32>
    %66 = tpu.matmul %56, %65, %cst_23 {dimension_numbers = #tpu.dot_dimension_numbers<[1], [0], [0], [1], [0, 0, 1, 1], [], []>} : vector<32x64xbf16>, vector<64x128xbf16>, vector<32x128xf32> -> vector<32x128xf32>
    %67 = arith.addf %63, %66 : vector<32x128xf32>
    %cst_24 = arith.constant dense<0.000000e+00> : vector<128xf32>
    %68 = vector.multi_reduction <add>, %67, %cst_24 [0] : vector<32x128xf32> to vector<128xf32>
    %69 = vector.shape_cast %68 : vector<128xf32> to vector<1x128xf32>
    %70 = arith.mulf %67, %67 : vector<32x128xf32>
    %cst_25 = arith.constant dense<0.000000e+00> : vector<128xf32>
    %71 = vector.multi_reduction <add>, %70, %cst_25 [0] : vector<32x128xf32> to vector<128xf32>
    %72 = vector.shape_cast %71 : vector<128xf32> to vector<1x128xf32>
    %c0_26 = arith.constant 0 : index
    %c0_27 = arith.constant 0 : index
    %73 = vector.load %arg7[%c0_26, %c0_27] : memref<128x8xf32, #tpu.memory_space<vmem>>, vector<128x8xf32>
    %cst_28 = arith.constant dense<0.000000e+00> : vector<1x8xf32>
    %74 = tpu.matmul %69, %73, %cst_28 {dimension_numbers = #tpu.dot_dimension_numbers<[1], [0], [0], [1], [0, 0, 1, 1], [], []>} : vector<1x128xf32>, vector<128x8xf32>, vector<1x8xf32> -> vector<1x8xf32>
    %cst_29 = arith.constant 5.120000e+02 : f32
    %75 = vector.broadcast %cst_29 : f32 to vector<1x8xf32>
    %76 = arith.divf %74, %75 : vector<1x8xf32>
    %c0_30 = arith.constant 0 : index
    %c0_31 = arith.constant 0 : index
    %77 = vector.load %arg7[%c0_30, %c0_31] : memref<128x8xf32, #tpu.memory_space<vmem>>, vector<128x8xf32>
    %cst_32 = arith.constant dense<0.000000e+00> : vector<1x8xf32>
    %78 = tpu.matmul %72, %77, %cst_32 {dimension_numbers = #tpu.dot_dimension_numbers<[1], [0], [0], [1], [0, 0, 1, 1], [], []>} : vector<1x128xf32>, vector<128x8xf32>, vector<1x8xf32> -> vector<1x8xf32>
    %cst_33 = arith.constant 5.120000e+02 : f32
    %79 = vector.broadcast %cst_33 : f32 to vector<1x8xf32>
    %80 = arith.divf %78, %79 : vector<1x8xf32>
    %81 = arith.mulf %76, %76 : vector<1x8xf32>
    %82 = arith.subf %80, %81 : vector<1x8xf32>
    %cst_34 = arith.constant 0.000000e+00 : f32
    %83 = vector.broadcast %cst_34 : f32 to vector<1x8xf32>
    %84 = arith.maximumf %82, %83 : vector<1x8xf32>
    %c0_35 = arith.constant 0 : index
    %c0_36 = arith.constant 0 : index
    %85 = vector.load %arg3[%c0_35, %c0_36] : memref<1x8xf32, #tpu.memory_space<vmem>>, vector<1x8xf32>
    %cst_37 = arith.constant 9.99999974E-6 : f32
    %86 = vector.broadcast %cst_37 : f32 to vector<1x8xf32>
    %87 = arith.addf %84, %86 : vector<1x8xf32>
    %88 = math.rsqrt %87 : vector<1x8xf32>
    %89 = arith.mulf %85, %88 : vector<1x8xf32>
    %c0_38 = arith.constant 0 : index
    %c0_39 = arith.constant 0 : index
    %90 = vector.load %arg4[%c0_38, %c0_39] : memref<1x8xf32, #tpu.memory_space<vmem>>, vector<1x8xf32>
    %91 = arith.mulf %76, %89 : vector<1x8xf32>
    %92 = arith.subf %90, %91 : vector<1x8xf32>
    %93 = arith.truncf %89 : vector<1x8xf32> to vector<1x8xbf16>
    %c0_40 = arith.constant 0 : index
    %c0_41 = arith.constant 0 : index
    %94 = vector.load %arg8[%c0_40, %c0_41] : memref<8x128xbf16, #tpu.memory_space<vmem>>, vector<8x128xbf16>
    %cst_42 = arith.constant dense<0.000000e+00> : vector<1x128xf32>
    %95 = tpu.matmul %93, %94, %cst_42 {dimension_numbers = #tpu.dot_dimension_numbers<[1], [0], [0], [1], [0, 0, 1, 1], [], []>} : vector<1x8xbf16>, vector<8x128xbf16>, vector<1x128xf32> -> vector<1x128xf32>
    %96 = arith.truncf %92 : vector<1x8xf32> to vector<1x8xbf16>
    %c0_43 = arith.constant 0 : index
    %c0_44 = arith.constant 0 : index
    %97 = vector.load %arg8[%c0_43, %c0_44] : memref<8x128xbf16, #tpu.memory_space<vmem>>, vector<8x128xbf16>
    %cst_45 = arith.constant dense<0.000000e+00> : vector<1x128xf32>
    %98 = tpu.matmul %96, %97, %cst_45 {dimension_numbers = #tpu.dot_dimension_numbers<[1], [0], [0], [1], [0, 0, 1, 1], [], []>} : vector<1x8xbf16>, vector<8x128xbf16>, vector<1x128xf32> -> vector<1x128xf32>
    %99 = vector.broadcast %95 : vector<1x128xf32> to vector<32x128xf32>
    %100 = arith.mulf %67, %99 : vector<32x128xf32>
    %101 = vector.broadcast %98 : vector<1x128xf32> to vector<32x128xf32>
    %102 = arith.addf %100, %101 : vector<32x128xf32>
    %cst_46 = arith.constant 0.000000e+00 : f32
    %103 = vector.broadcast %cst_46 : f32 to vector<32x128xf32>
    %104 = arith.maximumf %102, %103 : vector<32x128xf32>
    %105 = arith.truncf %104 : vector<32x128xf32> to vector<32x128xbf16>
    %cst_47 = arith.constant dense<0.000000e+00> : vector<32x128xf32>
    %106 = tpu.matmul %26, %105, %cst_47 {dimension_numbers = #tpu.dot_dimension_numbers<[1], [0], [0], [1], [0, 0, 1, 1], [], []>} : vector<32x32xbf16>, vector<32x128xbf16>, vector<32x128xf32> -> vector<32x128xf32>
    %107 = arith.truncf %106 : vector<32x128xf32> to vector<32x128xbf16>
    %cst_48 = arith.constant dense<0.000000e+00> : vector<32x128xf32>
    %108 = tpu.matmul %51, %105, %cst_48 {dimension_numbers = #tpu.dot_dimension_numbers<[1], [0], [0], [1], [0, 0, 1, 1], [], []>} : vector<32x32xbf16>, vector<32x128xbf16>, vector<32x128xf32> -> vector<32x128xf32>
    %109 = arith.truncf %108 : vector<32x128xf32> to vector<32x128xbf16>
    %c1_49 = arith.constant 1 : index
    %c0_50 = arith.constant 0 : index
    %c0_51 = arith.constant 0 : index
    %110 = vector.load %arg2[%c1_49, %c0_50, %c0_51] : memref<3x128x128xbf16, #tpu.memory_space<vmem>>, vector<1x128x128xbf16>
    %111 = vector.shape_cast %110 : vector<1x128x128xbf16> to vector<128x128xbf16>
    %cst_52 = arith.constant dense<0.000000e+00> : vector<32x128xf32>
    %112 = tpu.matmul %105, %111, %cst_52 {dimension_numbers = #tpu.dot_dimension_numbers<[1], [0], [0], [1], [0, 0, 1, 1], [], []>} : vector<32x128xbf16>, vector<128x128xbf16>, vector<32x128xf32> -> vector<32x128xf32>
    %c0_53 = arith.constant 0 : index
    %c0_54 = arith.constant 0 : index
    %c0_55 = arith.constant 0 : index
    %113 = vector.load %arg2[%c0_53, %c0_54, %c0_55] : memref<3x128x128xbf16, #tpu.memory_space<vmem>>, vector<1x128x128xbf16>
    %114 = vector.shape_cast %113 : vector<1x128x128xbf16> to vector<128x128xbf16>
    %cst_56 = arith.constant dense<0.000000e+00> : vector<32x128xf32>
    %115 = tpu.matmul %107, %114, %cst_56 {dimension_numbers = #tpu.dot_dimension_numbers<[1], [0], [0], [1], [0, 0, 1, 1], [], []>} : vector<32x128xbf16>, vector<128x128xbf16>, vector<32x128xf32> -> vector<32x128xf32>
    %116 = arith.addf %112, %115 : vector<32x128xf32>
    %c2_57 = arith.constant 2 : index
    %c0_58 = arith.constant 0 : index
    %c0_59 = arith.constant 0 : index
    %117 = vector.load %arg2[%c2_57, %c0_58, %c0_59] : memref<3x128x128xbf16, #tpu.memory_space<vmem>>, vector<1x128x128xbf16>
    %118 = vector.shape_cast %117 : vector<1x128x128xbf16> to vector<128x128xbf16>
    %cst_60 = arith.constant dense<0.000000e+00> : vector<32x128xf32>
    %119 = tpu.matmul %109, %118, %cst_60 {dimension_numbers = #tpu.dot_dimension_numbers<[1], [0], [0], [1], [0, 0, 1, 1], [], []>} : vector<32x128xbf16>, vector<128x128xbf16>, vector<32x128xf32> -> vector<32x128xf32>
    %120 = arith.addf %116, %119 : vector<32x128xf32>
    %cst_61 = arith.constant dense<0.000000e+00> : vector<128xf32>
    %121 = vector.multi_reduction <add>, %120, %cst_61 [0] : vector<32x128xf32> to vector<128xf32>
    %122 = vector.shape_cast %121 : vector<128xf32> to vector<1x128xf32>
    %123 = arith.mulf %120, %120 : vector<32x128xf32>
    %cst_62 = arith.constant dense<0.000000e+00> : vector<128xf32>
    %124 = vector.multi_reduction <add>, %123, %cst_62 [0] : vector<32x128xf32> to vector<128xf32>
    %125 = vector.shape_cast %124 : vector<128xf32> to vector<1x128xf32>
    %c0_63 = arith.constant 0 : index
    %c0_64 = arith.constant 0 : index
    %126 = vector.load %arg7[%c0_63, %c0_64] : memref<128x8xf32, #tpu.memory_space<vmem>>, vector<128x8xf32>
    %cst_65 = arith.constant dense<0.000000e+00> : vector<1x8xf32>
    %127 = tpu.matmul %122, %126, %cst_65 {dimension_numbers = #tpu.dot_dimension_numbers<[1], [0], [0], [1], [0, 0, 1, 1], [], []>} : vector<1x128xf32>, vector<128x8xf32>, vector<1x8xf32> -> vector<1x8xf32>
    %cst_66 = arith.constant 5.120000e+02 : f32
    %128 = vector.broadcast %cst_66 : f32 to vector<1x8xf32>
    %129 = arith.divf %127, %128 : vector<1x8xf32>
    %c0_67 = arith.constant 0 : index
    %c0_68 = arith.constant 0 : index
    %130 = vector.load %arg7[%c0_67, %c0_68] : memref<128x8xf32, #tpu.memory_space<vmem>>, vector<128x8xf32>
    %cst_69 = arith.constant dense<0.000000e+00> : vector<1x8xf32>
    %131 = tpu.matmul %125, %130, %cst_69 {dimension_numbers = #tpu.dot_dimension_numbers<[1], [0], [0], [1], [0, 0, 1, 1], [], []>} : vector<1x128xf32>, vector<128x8xf32>, vector<1x8xf32> -> vector<1x8xf32>
    %cst_70 = arith.constant 5.120000e+02 : f32
    %132 = vector.broadcast %cst_70 : f32 to vector<1x8xf32>
    %133 = arith.divf %131, %132 : vector<1x8xf32>
    %134 = arith.mulf %129, %129 : vector<1x8xf32>
    %135 = arith.subf %133, %134 : vector<1x8xf32>
    %cst_71 = arith.constant 0.000000e+00 : f32
    %136 = vector.broadcast %cst_71 : f32 to vector<1x8xf32>
    %137 = arith.maximumf %135, %136 : vector<1x8xf32>
    %c0_72 = arith.constant 0 : index
    %c0_73 = arith.constant 0 : index
    %138 = vector.load %arg5[%c0_72, %c0_73] : memref<1x8xf32, #tpu.memory_space<vmem>>, vector<1x8xf32>
    %cst_74 = arith.constant 9.99999974E-6 : f32
    %139 = vector.broadcast %cst_74 : f32 to vector<1x8xf32>
    %140 = arith.addf %137, %139 : vector<1x8xf32>
    %141 = math.rsqrt %140 : vector<1x8xf32>
    %142 = arith.mulf %138, %141 : vector<1x8xf32>
    %c0_75 = arith.constant 0 : index
    %c0_76 = arith.constant 0 : index
    %143 = vector.load %arg6[%c0_75, %c0_76] : memref<1x8xf32, #tpu.memory_space<vmem>>, vector<1x8xf32>
    %144 = arith.mulf %129, %142 : vector<1x8xf32>
    %145 = arith.subf %143, %144 : vector<1x8xf32>
    %146 = arith.truncf %142 : vector<1x8xf32> to vector<1x8xbf16>
    %c0_77 = arith.constant 0 : index
    %c0_78 = arith.constant 0 : index
    %147 = vector.load %arg8[%c0_77, %c0_78] : memref<8x128xbf16, #tpu.memory_space<vmem>>, vector<8x128xbf16>
    %cst_79 = arith.constant dense<0.000000e+00> : vector<1x128xf32>
    %148 = tpu.matmul %146, %147, %cst_79 {dimension_numbers = #tpu.dot_dimension_numbers<[1], [0], [0], [1], [0, 0, 1, 1], [], []>} : vector<1x8xbf16>, vector<8x128xbf16>, vector<1x128xf32> -> vector<1x128xf32>
    %149 = arith.truncf %145 : vector<1x8xf32> to vector<1x8xbf16>
    %c0_80 = arith.constant 0 : index
    %c0_81 = arith.constant 0 : index
    %150 = vector.load %arg8[%c0_80, %c0_81] : memref<8x128xbf16, #tpu.memory_space<vmem>>, vector<8x128xbf16>
    %cst_82 = arith.constant dense<0.000000e+00> : vector<1x128xf32>
    %151 = tpu.matmul %149, %150, %cst_82 {dimension_numbers = #tpu.dot_dimension_numbers<[1], [0], [0], [1], [0, 0, 1, 1], [], []>} : vector<1x8xbf16>, vector<8x128xbf16>, vector<1x128xf32> -> vector<1x128xf32>
    %152 = vector.broadcast %148 : vector<1x128xf32> to vector<32x128xf32>
    %153 = arith.mulf %120, %152 : vector<32x128xf32>
    %154 = vector.broadcast %151 : vector<1x128xf32> to vector<32x128xf32>
    %155 = arith.addf %153, %154 : vector<32x128xf32>
    %cst_83 = arith.constant 0.000000e+00 : f32
    %156 = vector.broadcast %cst_83 : f32 to vector<32x128xf32>
    %157 = arith.maximumf %155, %156 : vector<32x128xf32>
    %c0_84 = arith.constant 0 : index
    %c0_85 = arith.constant 0 : index
    %158 = vector.load %arg9[%c0_84, %c0_85] : memref<32x128xf32, #tpu.memory_space<vmem>>, vector<32x128xf32>
    tpu.vector_store %arg9[%c0_84, %c0_85], %157 {strides = array<i32>} : memref<32x128xf32, #tpu.memory_space<vmem>>, vector<32x128xf32>,
    return
  }
}

</mosaic_0001>

<bundles_post_ra>
// kernel: tpu_custom_call.1
= control target key start
LH: loop header
LB: loop body
LE: loop exit
PB: predicated region body
PF: predicated region fallthrough
CT: control target
= control target key end

     0   :  { %14 = vsyncpa [#allocation3], 0  ;;  %s2673_s0 = inlined_call_operand.vmem [shape: bf16[32,64], index: 0, kind: input, shape index: {}]   ;;  %s2674_s1 = inlined_call_operand.vmem [shape: bf16[3,64,128], index: 1, kind: input, shape index: {}]   ;;  %s2675_s2 = inlined_call_operand.hbm [shape: bf16[3,128,128], index: 2, kind: input, shape index: {}]   ;;  %s2676_s3 = inlined_call_operand.vmem [shape: f32[1,8], index: 3, kind: input, shape index: {}]   ;;  %s2677_s4 = inlined_call_operand.vmem [shape: f32[1,8], index: 4, kind: input, shape index: {}]   ;;  %s2678_s5 = inlined_call_operand.vmem [shape: f32[1,8], index: 5, kind: input, shape index: {}]   ;;  %s2679_s6 = inlined_call_operand.vmem [shape: f32[1,8], index: 6, kind: input, shape index: {}]   ;;  %s2680_s7 = inlined_call_operand.vmem [shape: f32[128,8], index: 7, kind: input, shape index: {}]   ;;  %s2681_s8 = inlined_call_operand.vmem [shape: bf16[8,128], index: 8, kind: input, shape index: {}]   ;;  %s2682_s9 = inlined_call_operand.hbm [shape: f32[32,128], index: 9, kind: output, shape index: {}]  }
   0x1   :  { %15 = vsyncpa [#allocation4], 0  ;;  %s2221_s30 = smov [#allocation2]  }
   0x2   :  { %s25_s10 = sshll.u32 %s2221_s30, 4  ;;  %s26_s10 = int_to_ptr.vmem [resolvable:$true] %s25_s10 }
   0x3   :  { %s2185_s11 = scalar_lea.vmem %s26_s10, 3072  ;;  %p2190_p1 = scmp.lt.s32.totalorder %s26_s10, %s26_s10 }
   0x4   :  { %p2186_p0 = scmp.ne.s32.totalorder %s26_s10, %s2185_s11  ;;  %p2191_p2 = scmp.lt.s32.totalorder %s2185_s11, %s2185_s11 }
   0x6   :  { %p2192_p3 = por %p2191_p2, %p2190_p1 }
   0x8   :  { %p2193_p4 = pnand %p2192_p3, %p2186_p0 }
   0xa   :  { %2196 = shalt.err (!%p2193_p4)
}
   0xb   :  { %s2222_s12 = smov 64   ;;  %s2223_s13 = smov 4  }
   0xc   :  { %31 = dma.hbm_to_vmem [thread:$0]  %s2675_s2, 3072, %s26_s10, [#allocation3], %s2222_s12, %s2222_s12, %s2223_s13  }
   0xd   :  { %2217 = dma.done.wait [#allocation3], 3072  }
   0xe   :  { %2218 = vsyncadd [#allocation3], 4294964224  ;;  %v48_v0 = vlaneseq  ;;  %vm171_vm0 = vcmask 261120   ;;  %v2293_v11 = vld [vmem:[%s2673_s0 + $0x8] sm:$0xff]   ;;  %v2298_v13 = vld [vmem:[%s2673_s0] sm:$0xff]   ;;  %v2224_v15 = vmov 0.0  }
   0xf   :  { %1835 = vmatprep.subr.bf16.mxu0 %v2293_v11  ;;  %1843 = vmatprep.subr.bf16.mxu1 %v2293_v11  ;;  %v2137_v19 = vld [vmem:[%s2674_s1 + $0x18] sm:$0xff]   ;;  %v2139_v31 = vld [vmem:[%s2674_s1 + $0x10] sm:$0xff]   ;;  %v2141_v37 = vld [vmem:[%s2674_s1 + $0x8] sm:$0xff]  }
  0x10   :  { %v2282_v1 = vshrl.u32 %v48_v0, 7  ;;  %v54_v2 = vand.u32 127, %v48_v0  ;;  %1836 = vmatpush3.bf16.msra.mxu0 %v2293_v11  ;;  %1844 = vmatpush3.bf16.msra.mxu1 %v2293_v11  ;;  %v2138_v28 = vld [vmem:[%s2674_s1 + $0x38] sm:$0xff]   ;;  %v2140_v35 = vld [vmem:[%s2674_s1 + $0x30] sm:$0xff]   ;;  %v2142_v38 = vld [vmem:[%s2674_s1 + $0x28] sm:$0xff]  }
  0x11   :  { %1837 = vmatprep.subr.bf16.mxu0 %v2298_v13  ;;  %1845 = vmatprep.subr.bf16.mxu1 %v2298_v13  ;;  %v2143_v39 = vld [vmem:[%s2674_s1] sm:$0xff]   ;;  %v2145_v41 = vld [vmem:[%s2674_s1 + $0x58] sm:$0xff]   ;;  %v2146_v51 = vld [vmem:[%s2674_s1 + $0x50] sm:$0xff]  }
  0x12   :  { %v50_v3 = vadd.s32 8, %v2282_v1  ;;  %v1611_v4 = vadd.s32 4294967295, %v2282_v1  ;;  %v67_v5 = vand.u32 15, %v2282_v1  ;;  %v51_v6 = vadd.s32 16, %v2282_v1  ;;  %v2144_v40 = vld [vmem:[%s2674_s1 + $0x20] sm:$0xff]   ;;  %v2147_v54 = vld [vmem:[%s2674_s1 + $0x48] sm:$0xff]  }
  0x13   :  { %v52_v7 = vadd.s32 24, %v2282_v1  ;;  %v129_v8 = vadd.s32 1, %v2282_v1  ;;  %v2148_v55 = vld [vmem:[%s2674_s1 + $0x40] sm:$0xff]   ;;  %v2383_v57 = vld [vmem:[%s2680_s7 + $0x78] sm:$0xff]  ;;  %v2388_v58 = vld [vmem:[%s2680_s7 + $0x70] sm:$0xff] }
  0x14   :  { %v1612_v9 = vadd.s32 4294967295, %v50_v3  ;;  %vm59_vm1 = vcmp.eq.s32.totalorder %v54_v2, %v1611_v4  ;;  %vm111_vm2 = vcmp.ne.s32.totalorder %v67_v5, 0  ;;  %v1613_v10 = vadd.s32 4294967295, %v51_v6  ;;  %1838 = vmatpush3.bf16.msra.mxu0 %v2298_v13  ;;  %1846 = vmatpush3.bf16.msra.mxu1 %v2298_v13  ;;  %v2401_v59 = vld [vmem:[%s2680_s7 + $0x68] sm:$0xff]  ;;  %v2409_v60 = vld [vmem:[%s2680_s7 + $0x60] sm:$0xff]  ;;  %v2418_v61 = vld [vmem:[%s2680_s7 + $0x58] sm:$0xff] }
  0x15   :  { %v1614_v12 = vadd.s32 4294967295, %v52_v7  ;;  %vm133_vm3 = vcmp.eq.s32.totalorder %v54_v2, %v129_v8  ;;  %v81_v14 = vand.u32 15, %v51_v6  ;;  %vm115_vm6 = vmand %vm59_vm1, %vm111_vm2  ;;  %v74_v17 = vand.u32 15, %v50_v3  ;;  %1851 = vmatprep.subr.bf16.mxu0 %v2137_v19  ;;  %1863 = vmatprep.subr.bf16.mxu1 %v2138_v28  ;;  %v2427_v62 = vld [vmem:[%s2680_s7 + $0x50] sm:$0xff]  ;;  %v2436_v63 = vld [vmem:[%s2680_s7 + $0x48] sm:$0xff] }
  0x16   :  { %vm60_vm4 = vcmp.eq.s32.totalorder %v54_v2, %v1612_v9  ;;  %vm61_vm5 = vcmp.eq.s32.totalorder %v54_v2, %v1613_v10  ;;  %v130_v18 = vadd.s32 1, %v50_v3  ;;  %v1615_v20 = vsel %vm115_vm6, 1.0, %v2224_v15  ;;  %v2445_v0 = vld [vmem:[%s2680_s7 + $0x40] sm:$0xff]  ;;  %v2463_v3 = vld [vmem:[%s2680_s7 + $0x30] sm:$0xff]  ;;  %v2472_v4 = vld [vmem:[%s2680_s7 + $0x28] sm:$0xff] }
  0x17   :  { %v1616_v16 = vsel %vm60_vm4, 1.0, %v2224_v15  ;;  %vm62_vm7 = vcmp.eq.s32.totalorder %v54_v2, %v1614_v12  ;;  %vm113_vm8 = vcmp.ne.s32.totalorder %v81_v14, 0  ;;  %v1619_v22 = vsel %vm133_vm3, 1.0, %v2224_v15  ;;  %v2481_v5 = vld [vmem:[%s2680_s7 + $0x20] sm:$0xff]  ;;  %v2505_v8 = vld [vmem:[%s2680_s7 + $0x8] sm:$0xff] }
  0x18   :  { %v1618_v21 = vsel %vm62_vm7, 1.0, %v2224_v15  ;;  %v2313_v23 = vpack.c.bf16 %v1616_v16, %v1615_v20  ;;  %vm117_vm9 = vmand %vm61_vm5, %vm113_vm8  ;;  %vm134_vm10 = vcmp.eq.s32.totalorder %v54_v2, %v130_v18  ;;  %vm138_vm11 = vcmp.ne.s32.totalorder %v74_v17, 15  ;;  %v2514_v9 = vld [vmem:[%s2680_s7] sm:$0xff] }
  0x19   :  { %v88_v24 = vand.u32 15, %v52_v7  ;;  %v1617_v25 = vsel %vm117_vm9, 1.0, %v2224_v15  ;;  %vm142_vm12 = vmand %vm134_vm10, %vm138_vm11  ;;  %v131_v26 = vadd.s32 1, %v51_v6  ;;  %v132_v27 = vadd.s32 1, %v52_v7  ;;  %v2487_v6 = vld [vmem:[%s2680_s7 + $0x18] sm:$0xff]  ;;  %v2496_v7 = vld [vmem:[%s2680_s7 + $0x10] sm:$0xff] }
  0x1a   :  { %1839 = vmatprep.mubr.msk.bf16.mxu0 %vm171_vm0, %v2313_v23  ;;  %v2323_v29 = vpack.c.bf16 %v1618_v21, %v1617_v25  ;;  %v1620_v30 = vsel %vm142_vm12, 1.0, %v2224_v15  ;;  %vm327_vm2 = vcmask 523264   ;;  %vm2225_vm3 = vmmov 0  }
  0x1b   :  { %vm140_vm13 = vcmp.ne.s32.totalorder %v88_v24, 15  ;;  %v2331_v32 = vpack.c.bf16 %v1620_v30, %v1619_v22  ;;  %vm135_vm14 = vcmp.eq.s32.totalorder %v54_v2, %v131_v26  ;;  %vm136_vm15 = vcmp.eq.s32.totalorder %v54_v2, %v132_v27  ;;  %v2454_v2 = vld [vmem:[%s2680_s7 + $0x38] sm:$0xff] }
  0x1c   :  { %vm144_vm1 = vmand %vm136_vm15, %vm140_vm13  ;;  %v1621_v33 = vsel %vm135_vm14, 1.0, %v2224_v15  ;;  %1840 = vmatmul.mubr.msk.bf16.vlgmr.msra.gmra.mxu0 %vm171_vm0, %v2323_v29  ;;  %vm751_vm4 = vcmask 1043456   ;;  %vm747_vm5 = vcmask 64512  }
  0x1d   :  { %1847 = vmatprep.mubr.msk.bf16.mxu1 %vm171_vm0, %v2331_v32  ;;  %v1622_v34 = vsel %vm144_vm1, 1.0, %v2224_v15  ;;  %1852 = vmatpush3.bf16.msra.mxu0 %v2137_v19 }
  0x1e   :  { %v2342_v36 = vpack.c.bf16 %v1622_v34, %v1621_v33  ;;  %1853 = vmatprep.subr.bf16.mxu0 %v2139_v31 }
  0x20   :  { %1848 = vmatmul.mubr.msk.bf16.vlgmr.msra.gmra.mxu1 %vm171_vm0, %v2342_v36 }
  0x21   :  { %1864 = vmatpush3.bf16.msra.mxu1 %v2138_v28  ;;  %1854 = vmatpush3.bf16.msra.mxu0 %v2139_v31 }
  0x22   :  { %1865 = vmatprep.subr.bf16.mxu1 %v2140_v35  ;;  %1855 = vmatprep.subr.bf16.mxu0 %v2141_v37 }
  0x23   :  { %1871 = vmatprep.mubr.msk.bf16.mxu1 %vm327_vm2, %v2298_v13 }
  0x25   :  { %1866 = vmatpush3.bf16.msra.mxu1 %v2140_v35  ;;  %1856 = vmatpush3.bf16.msra.mxu0 %v2141_v37 }
  0x26   :  { %1867 = vmatprep.subr.bf16.mxu1 %v2142_v38  ;;  %1857 = vmatprep.subr.bf16.mxu0 %v2143_v39 }
  0x29   :  { %1868 = vmatpush3.bf16.msra.mxu1 %v2142_v38  ;;  %1858 = vmatpush3.bf16.msra.mxu0 %v2143_v39 }
  0x2a   :  { %1869 = vmatprep.subr.bf16.mxu1 %v2144_v40  ;;  %1875 = vmatprep.subr.bf16.mxu0 %v2145_v41 }
  0x2d   :  { %1870 = vmatpush3.bf16.msra.mxu1 %v2144_v40 }
  0x2e   :  { %1887 = vmatprep.subr.mxu1 %v2224_v15 }
  0x30   :  { %1872 = vmatmul.mubr.msk.bf16.vlgmr.msra.gmra.mxu1 %vm327_vm2, %v2293_v11 }
  0x31   :  { %1888 = vmatpush3.msra.mxu1 %v2383_v57  ;;  %1919 = vmatprep.mubr.msk.f32.mxu1 %vm2225_vm3, %v2224_v15 }
  0x32   :  { %1889 = vmatprep.subr.mxu1 %v2224_v15 }
  0x33   :  { %1890 = vmatpush3.msra.mxu1 %v2388_v58 }
  0x34   :  { %1891 = vmatprep.subr.mxu1 %v2224_v15 }
  0x35   :  { %1892 = vmatpush3.msra.mxu1 %v2401_v59 }
  0x36   :  { %1893 = vmatprep.subr.mxu1 %v2224_v15 }
  0x37   :  { %1894 = vmatpush3.msra.mxu1 %v2409_v60 }
  0x38   :  { %1895 = vmatprep.subr.mxu1 %v2224_v15 }
  0x39   :  { %1896 = vmatpush3.msra.mxu1 %v2418_v61 }
  0x3a   :  { %1897 = vmatprep.subr.mxu1 %v2224_v15 }
  0x3b   :  { %1898 = vmatpush3.msra.mxu1 %v2427_v62 }
  0x3c   :  { %1899 = vmatprep.subr.mxu1 %v2224_v15 }
  0x3d   :  { %1900 = vmatpush3.msra.mxu1 %v2436_v63 }
  0x3e   :  { %1901 = vmatprep.subr.mxu1 %v2224_v15 }
  0x3f   :  { %1902 = vmatpush3.msra.mxu1 %v2445_v0 }
  0x40   :  { %1903 = vmatprep.subr.mxu1 %v2224_v15 }
  0x41   :  { %1904 = vmatpush3.msra.mxu1 %v2454_v2 }
  0x42   :  { %1905 = vmatprep.subr.mxu1 %v2224_v15 }
  0x43   :  { %1906 = vmatpush3.msra.mxu1 %v2463_v3 }
  0x44   :  { %1907 = vmatprep.subr.mxu1 %v2224_v15 }
  0x45   :  { %1908 = vmatpush3.msra.mxu1 %v2472_v4 }
  0x46   :  { %1909 = vmatprep.subr.mxu1 %v2224_v15 }
  0x47   :  { %1910 = vmatpush3.msra.mxu1 %v2481_v5 }
  0x48   :  { %1911 = vmatprep.subr.mxu1 %v2224_v15 }
  0x49   :  { %1912 = vmatpush3.msra.mxu1 %v2487_v6 }
  0x4a   :  { %1913 = vmatprep.subr.mxu1 %v2224_v15 }
  0x4b   :  { %1914 = vmatpush3.msra.mxu1 %v2496_v7 }
  0x4c   :  { %1915 = vmatprep.subr.mxu1 %v2224_v15 }
  0x4d   :  { %1916 = vmatpush3.msra.mxu1 %v2505_v8 }
  0x4e   :  { %1917 = vmatprep.subr.mxu1 %v2224_v15 }
  0x4f   :  { %1918 = vmatpush3.msra.mxu1 %v2514_v9 }
  0x50   :  { %1963 = vmatprep.subr.bf16.mxu1 %v2224_v15 }
  0xdc   :  { %v1841_v42 = vpop.f32.mrf.mxu0 }
  0xde   :  { %v212_v43 = vpop.f32.mrf.mxu0 }
  0xe0   :  { %v1849_v44 = vpop.f32.mrf.mxu1  ;;  %v1842_v45 = vpop.f32.mrf.mxu0 }
  0xe1   :  { %v228_v50 = vpack.c.bf16 %v1842_v45, %v1841_v42 }
  0xe2   :  { %v269_v46 = vpop.f32.mrf.mxu1  ;;  %v215_v47 = vpop.f32.mrf.mxu0 }
  0xe3   :  { %v227_v49 = vpack.c.bf16 %v215_v47, %v212_v43 }
  0xe4   :  { %v1850_v48 = vpop.f32.mrf.mxu1 }
  0xe5   :  { %1859 = vmatprep.mubr.msk.bf16.mxu0 %vm327_vm2, %v227_v49  ;;  %v285_v56 = vpack.c.bf16 %v1850_v48, %v1849_v44 }
  0xe6   :  { %v272_v52 = vpop.f32.mrf.mxu1  ;;  %1860 = vmatmul.mubr.msk.bf16.vlgmr.msra.gmra.mxu0 %vm327_vm2, %v228_v50 }
  0xe7   :  { %v284_v53 = vpack.c.bf16 %v272_v52, %v269_v46  ;;  %1876 = vmatpush3.bf16.msra.mxu0 %v2145_v41 }
  0xe8   :  { %1877 = vmatprep.subr.bf16.mxu0 %v2146_v51 }
  0xe9   :  { %1883 = vmatprep.mubr.msk.bf16.mxu0 %vm327_vm2, %v284_v53 }
  0xeb   :  { %1878 = vmatpush3.bf16.msra.mxu0 %v2146_v51 }
  0xec   :  { %1879 = vmatprep.subr.bf16.mxu0 %v2147_v54 }
  0xef   :  { %1880 = vmatpush3.bf16.msra.mxu0 %v2147_v54 }
  0xf0   :  { %1881 = vmatprep.subr.bf16.mxu0 %v2148_v55  ;;  %v1873_v11 = vpop.f32.mrf.mxu1 }
  0xf2   :  { %v447_v13 = vpop.f32.mrf.mxu1 }
  0xf3   :  { %1882 = vmatpush3.bf16.msra.mxu0 %v2148_v55 }
  0xf4   :  { %1922 = vmatprep.subr.mxu0 %v2224_v15  ;;  %v1874_v16 = vpop.f32.mrf.mxu1 }
  0xf6   :  { %1884 = vmatmul.mubr.msk.bf16.vlgmr.msra.gmra.mxu0 %vm327_vm2, %v285_v56  ;;  %v450_v19 = vpop.f32.mrf.mxu1 }
  0xf7   :  { %1923 = vmatpush3.msra.mxu0 %v2383_v57  ;;  %1954 = vmatprep.mubr.msk.f32.mxu0 %vm2225_vm3, %v2224_v15 }
  0xf8   :  { %1924 = vmatprep.subr.mxu0 %v2224_v15 }
  0xf9   :  { %1925 = vmatpush3.msra.mxu0 %v2388_v58 }
  0xfa   :  { %1926 = vmatprep.subr.mxu0 %v2224_v15 }
  0xfb   :  { %1927 = vmatpush3.msra.mxu0 %v2401_v59 }
  0xfc   :  { %1928 = vmatprep.subr.mxu0 %v2224_v15 }
  0xfd   :  { %1929 = vmatpush3.msra.mxu0 %v2409_v60 }
  0xfe   :  { %1930 = vmatprep.subr.mxu0 %v2224_v15 }
  0xff   :  { %1931 = vmatpush3.msra.mxu0 %v2418_v61 }
 0x100   :  { %1932 = vmatprep.subr.mxu0 %v2224_v15 }
 0x101   :  { %1933 = vmatpush3.msra.mxu0 %v2427_v62 }
 0x102   :  { %1934 = vmatprep.subr.mxu0 %v2224_v15 }
 0x103   :  { %1935 = vmatpush3.msra.mxu0 %v2436_v63 }
 0x104   :  { %1936 = vmatprep.subr.mxu0 %v2224_v15 }
 0x105   :  { %1937 = vmatpush3.msra.mxu0 %v2445_v0 }
 0x106   :  { %1938 = vmatprep.subr.mxu0 %v2224_v15 }
 0x107   :  { %1939 = vmatpush3.msra.mxu0 %v2454_v2 }
 0x108   :  { %1940 = vmatprep.subr.mxu0 %v2224_v15 }
 0x109   :  { %1941 = vmatpush3.msra.mxu0 %v2463_v3 }
 0x10a   :  { %1942 = vmatprep.subr.mxu0 %v2224_v15 }
 0x10b   :  { %1943 = vmatpush3.msra.mxu0 %v2472_v4 }
 0x10c   :  { %1944 = vmatprep.subr.mxu0 %v2224_v15 }
 0x10d   :  { %1945 = vmatpush3.msra.mxu0 %v2481_v5 }
 0x10e   :  { %1946 = vmatprep.subr.mxu0 %v2224_v15 }
 0x10f   :  { %1947 = vmatpush3.msra.mxu0 %v2487_v6 }
 0x110   :  { %1948 = vmatprep.subr.mxu0 %v2224_v15 }
 0x111   :  { %1949 = vmatpush3.msra.mxu0 %v2496_v7 }
 0x112   :  { %1950 = vmatprep.subr.mxu0 %v2224_v15 }
 0x113   :  { %1951 = vmatpush3.msra.mxu0 %v2505_v8 }
 0x114   :  { %1952 = vmatprep.subr.mxu0 %v2224_v15 }
 0x115   :  { %1953 = vmatpush3.msra.mxu0 %v2514_v9 }
 0x116   :  { %1957 = vmatprep.subr.bf16.mxu0 %v2224_v15 }
 0x1a6   :  { %v1861_v10 = vpop.f32.mrf.mxu0 }
 0x1a7   :  { %v456_v24 = vadd.f32 %v1873_v11, %v1861_v10  ;;  %v746_v10 = vld [vmem:[%s2681_s8] sm:$0xf] }
 0x1a8   :  { %v368_v12 = vpop.f32.mrf.mxu0  ;;  %v2555_v11 = vsel %vm751_vm4, %v746_v10, 0 }
 0x1a9   :  { %v448_v21 = vadd.f32 %v447_v13, %v368_v12 }
 0x1aa   :  { %v1862_v14 = vpop.f32.mrf.mxu0 }
 0x1ab   :  { %v459_v28 = vadd.f32 %v1874_v16, %v1862_v14 }
 0x1ac   :  { %v371_v17 = vpop.f32.mrf.mxu0 }
 0x1ad   :  { %v451_v25 = vadd.f32 %v450_v19, %v371_v17 }
 0x1b6   :  { %v1885_v18 = vpop.f32.mrf.mxu0 }
 0x1b7   :  { %v2530_v30 = vadd.f32 %v1885_v18, %v456_v24  ;;  %v738_v24 = vld [vmem:[%s2676_s3] sm:$0x1] }
 0x1b8   :  { %v535_v20 = vpop.f32.mrf.mxu0 }
 0x1b9   :  { %v2528_v26 = vadd.f32 %v535_v20, %v448_v21  ;;  %v565_v38 = vmul.f32 %v2530_v30, %v2530_v30 }
 0x1ba   :  { %v1886_v22 = vpop.f32.mrf.mxu0 }
 0x1bb   :  { %v563_v33 = vmul.f32 %v2528_v26, %v2528_v26  ;;  %v2536_v34 = vadd.f32 %v1886_v22, %v459_v28  ;;  %v742_v28 = vld [vmem:[%s2677_s4] sm:$0x1] }
 0x1bc   :  { %v538_v27 = vpop.f32.mrf.mxu0 }
 0x1bd   :  { %v2532_v31 = vadd.f32 %v538_v27, %v451_v25  ;;  %v566_v41 = vmul.f32 %v2536_v34, %v2536_v34 }
 0x1bf   :  { %v554_v35 = vadd.f32 %v2532_v31, %v2528_v26  ;;  %v564_v37 = vmul.f32 %v2532_v31, %v2532_v31 }
 0x1c1   :  { %v555_v39 = vadd.f32 %v554_v35, %v2530_v30  ;;  %v567_v40 = vadd.f32 %v564_v37, %v563_v33 }
 0x1c3   :  { %v556_v42 = vadd.f32 %v555_v39, %v2536_v34  ;;  %v568_v43 = vadd.f32 %v567_v40, %v565_v38  ;;  %v2572_v39 = vsub.s32 0, %v2282_v1 }
 0x1c5   :  { %v557_v44 = vrot.slane %v556_v42, 4  ;;  %v569_v45 = vadd.f32 %v568_v43, %v566_v41 }
 0x1c7   :  { %v558_v46 = vadd.f32 %v557_v44, %v556_v42  ;;  %v570_v47 = vrot.slane %v569_v45, 4 }
 0x1c9   :  { %v559_v48 = vrot.slane %v558_v46, 2  ;;  %v571_v49 = vadd.f32 %v570_v47, %v569_v45 }
 0x1cb   :  { %v560_v50 = vadd.f32 %v559_v48, %v558_v46  ;;  %v572_v51 = vrot.slane %v571_v49, 2 }
 0x1cd   :  { %v561_v52 = vrot.slane %v560_v50, 1  ;;  %v573_v53 = vadd.f32 %v572_v51, %v571_v49 }
 0x1cf   :  { %v562_v54 = vadd.f32 %v561_v52, %v560_v50  ;;  %v574_v55 = vrot.slane %v573_v53, 1 }
 0x1d1   :  { %1920 = vmatmul.mubr.f32.vlgmr.msra.gmra.mxu1 %v562_v54  ;;  %v575_v56 = vadd.f32 %v574_v55, %v573_v53 }
 0x1d2   :  { %1965 = vmatprep.mubr.msk.bf16.mxu1 %vm2225_vm3, %v2224_v15  ;;  %1964 = vmatpush3.bf16.msra.mxu1 %v2555_v11 }
 0x1d3   :  { %1955 = vmatmul.mubr.f32.vlgmr.msra.gmra.mxu0 %v575_v56 }
 0x1d4   :  { %1959 = vmatprep.mubr.msk.bf16.mxu0 %vm2225_vm3, %v2224_v15  ;;  %1958 = vmatpush3.bf16.msra.mxu0 %v2555_v11 }
 0x291   :  { %v658_v12 = vpop.f32.mrf.mxu1 }
 0x292   :  { %v663_v13 = vmul.f32 0.001953125, %v658_v12 }
 0x293   :  { %v1921_v14 = vpop.f32.mrf.mxu1  ;;  %v730_v16 = vpop.f32.mrf.mxu0 }
 0x294   :  { %v735_v17 = vmul.f32 %v663_v13, %v663_v13  ;;  %v734_v18 = vmul.f32 0.001953125, %v730_v16  ;;  %v2158_v14 = vld [vmem:[#allocation2 + $0x30] sm:$0xff]   ;;  %v2151_v16 = vld [vmem:[#allocation2 + $0x68] sm:$0xff]  }
 0x295   :  { %v1956_v19 = vpop.f32.mrf.mxu0 }
 0x296   :  { %v736_v20 = vsub.f32 %v734_v18, %v735_v17  ;;  %v2159_v17 = vld [vmem:[#allocation2 + $0x28] sm:$0xff]   ;;  %v2152_v18 = vld [vmem:[#allocation2 + $0x60] sm:$0xff]  }
 0x297   :  { %v2160_v19 = vld [vmem:[#allocation2 + $0x20] sm:$0xff]  }
 0x298   :  { %v737_v21 = vmax.f32 %v736_v20, 0.0  ;;  %v2153_v20 = vld [vmem:[#allocation2 + $0x58] sm:$0xff]  }
 0x29a   :  { %v739_v22 = vadd.f32 1e-05, %v737_v21  ;;  %v2162_v21 = vld [vmem:[#allocation2 + $0x10] sm:$0xff]  }
 0x29c   :  { %2173 = vrsqrt.f32 %v739_v22  ;;  %v2155_v22 = vld [vmem:[#allocation2 + $0x48] sm:$0xff]  }
 0x2a9   :  { %v2174_v25 = vpop.eup %2173 }
 0x2aa   :  { %v741_v27 = vmul.f32 %v2174_v25, %v738_v24  ;;  %v2156_v24 = vld [vmem:[#allocation2 + $0x40] sm:$0xff]   ;;  %v2163_v25 = vld [vmem:[#allocation2 + $0x8] sm:$0xff]  }
 0x2ac   :  { %v745_v33 = vpack.c.bf16 %v741_v27, %v741_v27  ;;  %v743_v35 = vmul.f32 %v741_v27, %v663_v13  ;;  %v2150_v13 = vld [vmem:[#allocation2 + $0x70] sm:$0xff]   ;;  %v2164_v27 = vld [vmem:[#allocation2] sm:$0xff]  }
 0x2ae   :  { %1960 = vmatmul.mubr.msk.bf16.vlgmr.msra.gmra.mxu0 %vm747_vm5, %v745_v33  ;;  %v744_v37 = vsub.f32 %v742_v28, %v743_v35  ;;  %v2165_v28 = vld [vmem:[#allocation2 + $0xb8] sm:$0xff]  }
 0x2af   :  { %1981 = vmatprep.mubr.msk.bf16.mxu0 %vm171_vm0, %v2331_v32 }
 0x2b0   :  { %v795_v38 = vpack.c.bf16 %v744_v37, %v744_v37 }
 0x2b2   :  { %1966 = vmatmul.mubr.msk.bf16.vlgmr.msra.gmra.mxu1 %vm747_vm5, %v795_v38 }
 0x2b3   :  { %1973 = vmatprep.mubr.msk.bf16.mxu1 %vm171_vm0, %v2313_v23 }
 0x36e   :  { %v789_v40 = vpop.f32.mrf.mxu0 }
 0x36f   :  { %v842_v41 = vrot.slane %v789_v40, %v2572_v39 }
 0x370   :  { %v1961_v42 = vpop.f32.mrf.mxu0 }
 0x371   :  { %v843_v43 = vmul.f32 %v842_v41, %v2528_v26  ;;  %v844_v46 = vmul.f32 %v842_v41, %v2532_v31  ;;  %v845_v32 = vmul.f32 %v842_v41, %v2530_v30  ;;  %v846_v47 = vmul.f32 %v842_v41, %v2536_v34  ;;  %v2149_v30 = vld [vmem:[#allocation2 + $0x78] sm:$0xff]  }
 0x372   :  { %v792_v44 = vpop.f32.mrf.mxu0  ;;  %v833_v45 = vpop.f32.mrf.mxu1  ;;  %v2157_v34 = vld [vmem:[#allocation2 + $0x38] sm:$0xff]  }
 0x373   :  { %v850_v48 = vrot.slane %v833_v45, %v2572_v39 }
 0x374   :  { %v1962_v23 = vpop.f32.mrf.mxu0  ;;  %v1967_v49 = vpop.f32.mrf.mxu1 }
 0x375   :  { %v851_v1 = vadd.f32 %v850_v48, %v843_v43  ;;  %v852_v50 = vadd.f32 %v850_v48, %v844_v46  ;;  %v853_v51 = vadd.f32 %v850_v48, %v845_v32  ;;  %v854_v52 = vadd.f32 %v850_v48, %v846_v47  ;;  %v2166_v32 = vld [vmem:[#allocation2 + $0xb0] sm:$0xff]   ;;  %v2167_v47 = vld [vmem:[#allocation2 + $0xa8] sm:$0xff]   ;;  %v2168_v48 = vld [vmem:[#allocation2 + $0xa0] sm:$0xff]  }
 0x376   :  { %v836_v53 = vpop.f32.mrf.mxu1  ;;  %v2169_v23 = vld [vmem:[#allocation2 + $0x98] sm:$0xff]   ;;  %v2170_v49 = vld [vmem:[#allocation2 + $0x90] sm:$0xff]  }
 0x377   :  { %v855_v54 = vmax.f32 %v851_v1, 0.0  ;;  %v856_v55 = vmax.f32 %v852_v50, 0.0  ;;  %v857_v26 = vmax.f32 %v853_v51, 0.0  ;;  %v858_v56 = vmax.f32 %v854_v52, 0.0  ;;  %v2171_v1 = vld [vmem:[#allocation2 + $0x88] sm:$0xff]   ;;  %v2172_v50 = vld [vmem:[#allocation2 + $0x80] sm:$0xff]  }
 0x378   :  { %v1968_v10 = vpop.f32.mrf.mxu1 }
 0x379   :  { %v860_v12 = vpack.c.bf16 %v858_v56, %v857_v26  ;;  %v859_v31 = vpack.c.bf16 %v856_v55, %v855_v54 }
 0x37b   :  { %1969 = vmatprep.subr.bf16.mxu1 %v860_v12  ;;  %1977 = vmatprep.subr.bf16.mxu0 %v860_v12 }
 0x37c   :  { %1970 = vmatpush3.bf16.msra.mxu1 %v860_v12  ;;  %1978 = vmatpush3.bf16.msra.mxu0 %v860_v12 }
 0x37d   :  { %1971 = vmatprep.subr.bf16.mxu1 %v859_v31  ;;  %1979 = vmatprep.subr.bf16.mxu0 %v859_v31 }
 0x380   :  { %1972 = vmatpush3.bf16.msra.mxu1 %v859_v31  ;;  %1980 = vmatpush3.bf16.msra.mxu0 %v859_v31 }
 0x381   :  { %2005 = vmatprep.subr.bf16.mxu0 %v2149_v30  ;;  %1985 = vmatprep.subr.bf16.mxu1 %v2157_v34 }
 0x383   :  { %1974 = vmatmul.mubr.msk.bf16.vlgmr.msra.gmra.mxu1 %vm171_vm0, %v2323_v29  ;;  %1982 = vmatmul.mubr.msk.bf16.vlgmr.msra.gmra.mxu0 %vm171_vm0, %v2342_v36  ;;  %v2161_v29 = vld [vmem:[#allocation2 + $0x18] sm:$0xff]   ;;  %v2154_v36 = vld [vmem:[#allocation2 + $0x50] sm:$0xff]  }
 0x384   :  { %2006 = vmatpush3.bf16.msra.mxu0 %v2149_v30  ;;  %2021 = vmatprep.mubr.bf16.mxu0 %v859_v31 }
 0x385   :  { %2007 = vmatprep.subr.bf16.mxu0 %v2150_v13  ;;  %1986 = vmatpush3.bf16.msra.mxu1 %v2157_v34 }
 0x386   :  { %1987 = vmatprep.subr.bf16.mxu1 %v2158_v14 }
 0x388   :  { %2008 = vmatpush3.bf16.msra.mxu0 %v2150_v13 }
 0x389   :  { %2009 = vmatprep.subr.bf16.mxu0 %v2151_v16  ;;  %1988 = vmatpush3.bf16.msra.mxu1 %v2158_v14 }
 0x38a   :  { %1989 = vmatprep.subr.bf16.mxu1 %v2159_v17 }
 0x38c   :  { %2010 = vmatpush3.bf16.msra.mxu0 %v2151_v16 }
 0x38d   :  { %2011 = vmatprep.subr.bf16.mxu0 %v2152_v18  ;;  %1990 = vmatpush3.bf16.msra.mxu1 %v2159_v17 }
 0x38e   :  { %1991 = vmatprep.subr.bf16.mxu1 %v2160_v19 }
 0x390   :  { %2012 = vmatpush3.bf16.msra.mxu0 %v2152_v18 }
 0x391   :  { %2013 = vmatprep.subr.bf16.mxu0 %v2153_v20  ;;  %1992 = vmatpush3.bf16.msra.mxu1 %v2160_v19 }
 0x392   :  { %1993 = vmatprep.subr.bf16.mxu1 %v2161_v29 }
 0x394   :  { %2014 = vmatpush3.bf16.msra.mxu0 %v2153_v20 }
 0x395   :  { %2015 = vmatprep.subr.bf16.mxu0 %v2154_v36  ;;  %1994 = vmatpush3.bf16.msra.mxu1 %v2161_v29 }
 0x396   :  { %1995 = vmatprep.subr.bf16.mxu1 %v2162_v21 }
 0x398   :  { %2016 = vmatpush3.bf16.msra.mxu0 %v2154_v36 }
 0x399   :  { %2017 = vmatprep.subr.bf16.mxu0 %v2155_v22  ;;  %1996 = vmatpush3.bf16.msra.mxu1 %v2162_v21 }
 0x39a   :  { %1997 = vmatprep.subr.bf16.mxu1 %v2163_v25 }
 0x39c   :  { %2018 = vmatpush3.bf16.msra.mxu0 %v2155_v22 }
 0x39d   :  { %2019 = vmatprep.subr.bf16.mxu0 %v2156_v24  ;;  %1998 = vmatpush3.bf16.msra.mxu1 %v2163_v25 }
 0x39e   :  { %1999 = vmatprep.subr.bf16.mxu1 %v2164_v27 }
 0x3a0   :  { %2020 = vmatpush3.bf16.msra.mxu0 %v2156_v24 }
 0x3a1   :  { %2045 = vmatprep.subr.mxu0 %v2224_v15  ;;  %2000 = vmatpush3.bf16.msra.mxu1 %v2164_v27 }
 0x3a2   :  { %2025 = vmatprep.subr.bf16.mxu1 %v2165_v28 }
 0x3a3   :  { %2022 = vmatmul.mubr.bf16.vlgmr.msra.gmra.mxu0 %v860_v12 }
 0x3a4   :  { %2046 = vmatpush3.msra.mxu0 %v2383_v57  ;;  %2077 = vmatprep.mubr.msk.f32.mxu0 %vm2225_vm3, %v2224_v15 }
 0x3a5   :  { %2047 = vmatprep.subr.mxu0 %v2224_v15 }
 0x3a6   :  { %2048 = vmatpush3.msra.mxu0 %v2388_v58 }
 0x3a7   :  { %2049 = vmatprep.subr.mxu0 %v2224_v15 }
 0x3a8   :  { %2050 = vmatpush3.msra.mxu0 %v2401_v59 }
 0x3a9   :  { %2051 = vmatprep.subr.mxu0 %v2224_v15 }
 0x3aa   :  { %2052 = vmatpush3.msra.mxu0 %v2409_v60 }
 0x3ab   :  { %2053 = vmatprep.subr.mxu0 %v2224_v15 }
 0x3ac   :  { %2054 = vmatpush3.msra.mxu0 %v2418_v61 }
 0x3ad   :  { %2055 = vmatprep.subr.mxu0 %v2224_v15 }
 0x3ae   :  { %2056 = vmatpush3.msra.mxu0 %v2427_v62 }
 0x3af   :  { %2057 = vmatprep.subr.mxu0 %v2224_v15 }
 0x3b0   :  { %2058 = vmatpush3.msra.mxu0 %v2436_v63 }
 0x3b1   :  { %2059 = vmatprep.subr.mxu0 %v2224_v15 }
 0x3b2   :  { %2060 = vmatpush3.msra.mxu0 %v2445_v0 }
 0x3b3   :  { %2061 = vmatprep.subr.mxu0 %v2224_v15 }
 0x3b4   :  { %2062 = vmatpush3.msra.mxu0 %v2454_v2 }
 0x3b5   :  { %2063 = vmatprep.subr.mxu0 %v2224_v15 }
 0x3b6   :  { %2064 = vmatpush3.msra.mxu0 %v2463_v3 }
 0x3b7   :  { %2065 = vmatprep.subr.mxu0 %v2224_v15 }
 0x3b8   :  { %2066 = vmatpush3.msra.mxu0 %v2472_v4 }
 0x3b9   :  { %2067 = vmatprep.subr.mxu0 %v2224_v15 }
 0x3ba   :  { %2068 = vmatpush3.msra.mxu0 %v2481_v5 }
 0x3bb   :  { %2069 = vmatprep.subr.mxu0 %v2224_v15 }
 0x3bc   :  { %2070 = vmatpush3.msra.mxu0 %v2487_v6 }
 0x3bd   :  { %2071 = vmatprep.subr.mxu0 %v2224_v15 }
 0x3be   :  { %2072 = vmatpush3.msra.mxu0 %v2496_v7 }
 0x3bf   :  { %2073 = vmatprep.subr.mxu0 %v2224_v15 }
 0x3c0   :  { %2074 = vmatpush3.msra.mxu0 %v2505_v8 }
 0x3c1   :  { %2075 = vmatprep.subr.mxu0 %v2224_v15 }
 0x3c2   :  { %2076 = vmatpush3.msra.mxu0 %v2514_v9 }
 0x3c3   :  { %2115 = vmatprep.subr.bf16.mxu0 %v2224_v15 }
 0x443   :  { %v1975_v33 = vpop.f32.mrf.mxu1  ;;  %v1983_v35 = vpop.f32.mrf.mxu0 }
 0x445   :  { %v895_v37 = vpop.f32.mrf.mxu1  ;;  %v946_v38 = vpop.f32.mrf.mxu0 }
 0x447   :  { %v1976_v40 = vpop.f32.mrf.mxu1  ;;  %v1984_v41 = vpop.f32.mrf.mxu0 }
 0x448   :  { %v911_v46 = vpack.c.bf16 %v1976_v40, %v1975_v33  ;;  %v962_v51 = vpack.c.bf16 %v1984_v41, %v1983_v35 }
 0x449   :  { %v898_v42 = vpop.f32.mrf.mxu1  ;;  %v949_v43 = vpop.f32.mrf.mxu0 }
 0x44a   :  { %v910_v44 = vpack.c.bf16 %v898_v42, %v895_v37  ;;  %v961_v45 = vpack.c.bf16 %v949_v43, %v946_v38 }
 0x44c   :  { %2001 = vmatprep.mubr.bf16.mxu1 %v910_v44 }
 0x44d   :  { %2002 = vmatmul.mubr.bf16.vlgmr.msra.gmra.mxu1 %v911_v46  ;;  %v1475_v46 = vld [vmem:[%s2678_s5] sm:$0x1]  ;;  %s2226_s5 = smov [#allocation5]  }
 0x44e   :  { %2026 = vmatpush3.bf16.msra.mxu1 %v2165_v28  ;;  %2041 = vmatprep.mubr.bf16.mxu1 %v961_v45 }
 0x44f   :  { %2027 = vmatprep.subr.bf16.mxu1 %v2166_v32 }
 0x452   :  { %2028 = vmatpush3.bf16.msra.mxu1 %v2166_v32 }
 0x453   :  { %2029 = vmatprep.subr.bf16.mxu1 %v2167_v47 }
 0x456   :  { %2030 = vmatpush3.bf16.msra.mxu1 %v2167_v47 }
 0x457   :  { %2031 = vmatprep.subr.bf16.mxu1 %v2168_v48 }
 0x45a   :  { %2032 = vmatpush3.bf16.msra.mxu1 %v2168_v48 }
 0x45b   :  { %2033 = vmatprep.subr.bf16.mxu1 %v2169_v23 }
 0x45e   :  { %2034 = vmatpush3.bf16.msra.mxu1 %v2169_v23 }
 0x45f   :  { %2035 = vmatprep.subr.bf16.mxu1 %v2170_v49 }
 0x462   :  { %2036 = vmatpush3.bf16.msra.mxu1 %v2170_v49  ;;  %v1479_v49 = vld [vmem:[%s2679_s6] sm:$0x1]  ;;  %s1599_s6 = sshll.u32 %s2226_s5, 4  ;;  %s1600_s6 = int_to_ptr.vmem [resolvable:$true] %s1599_s6 }
 0x463   :  { %2037 = vmatprep.subr.bf16.mxu1 %v2171_v1  ;;  %s2197_s11 = scalar_lea.vmem %s1600_s6, 512  ;;  %p2202_p6 = scmp.lt.s32.totalorder %s1600_s6, %s1600_s6 }
 0x464   :  { %p2198_p5 = scmp.ne.s32.totalorder %s1600_s6, %s2197_s11  ;;  %p2203_p7 = scmp.lt.s32.totalorder %s2197_s11, %s2197_s11 }
 0x466   :  { %2038 = vmatpush3.bf16.msra.mxu1 %v2171_v1  ;;  %p2204_p8 = por %p2203_p7, %p2202_p6 }
 0x467   :  { %2039 = vmatprep.subr.bf16.mxu1 %v2172_v50 }
 0x468   :  { %p2205_p9 = pnand %p2204_p8, %p2198_p5 }
 0x46a   :  { %2040 = vmatpush3.bf16.msra.mxu1 %v2172_v50 }
 0x46b   :  { %2080 = vmatprep.subr.mxu1 %v2224_v15 }
 0x46d   :  { %2042 = vmatmul.mubr.bf16.vlgmr.msra.gmra.mxu1 %v962_v51 }
 0x46e   :  { %2081 = vmatpush3.msra.mxu1 %v2383_v57  ;;  %2112 = vmatprep.mubr.msk.f32.mxu1 %vm2225_vm3, %v2224_v15 }
 0x46f   :  { %2082 = vmatprep.subr.mxu1 %v2224_v15 }
 0x470   :  { %2083 = vmatpush3.msra.mxu1 %v2388_v58 }
 0x471   :  { %2084 = vmatprep.subr.mxu1 %v2224_v15 }
 0x472   :  { %2085 = vmatpush3.msra.mxu1 %v2401_v59  ;;  %v2023_v59 = vpop.f32.mrf.mxu0 }
 0x473   :  { %2086 = vmatprep.subr.mxu1 %v2224_v15 }
 0x474   :  { %2087 = vmatpush3.msra.mxu1 %v2409_v60 }
 0x475   :  { %2088 = vmatprep.subr.mxu1 %v2224_v15 }
 0x476   :  { %2089 = vmatpush3.msra.mxu1 %v2418_v61  ;;  %v1175_v61 = vpop.f32.mrf.mxu0 }
 0x477   :  { %2090 = vmatprep.subr.mxu1 %v2224_v15 }
 0x478   :  { %2091 = vmatpush3.msra.mxu1 %v2427_v62 }
 0x479   :  { %2092 = vmatprep.subr.mxu1 %v2224_v15 }
 0x47a   :  { %2093 = vmatpush3.msra.mxu1 %v2436_v63  ;;  %v2024_v63 = vpop.f32.mrf.mxu0 }
 0x47b   :  { %2094 = vmatprep.subr.mxu1 %v2224_v15 }
 0x47c   :  { %2095 = vmatpush3.msra.mxu1 %v2445_v0 }
 0x47d   :  { %2096 = vmatprep.subr.mxu1 %v2224_v15 }
 0x47e   :  { %2097 = vmatpush3.msra.mxu1 %v2454_v2 }
 0x47f   :  { %2098 = vmatprep.subr.mxu1 %v2224_v15 }
 0x480   :  { %2099 = vmatpush3.msra.mxu1 %v2463_v3 }
 0x481   :  { %2100 = vmatprep.subr.mxu1 %v2224_v15 }
 0x482   :  { %2101 = vmatpush3.msra.mxu1 %v2472_v4  ;;  %v1178_v4 = vpop.f32.mrf.mxu0 }
 0x483   :  { %2102 = vmatprep.subr.mxu1 %v2224_v15 }
 0x484   :  { %2103 = vmatpush3.msra.mxu1 %v2481_v5 }
 0x485   :  { %2104 = vmatprep.subr.mxu1 %v2224_v15 }
 0x486   :  { %2105 = vmatpush3.msra.mxu1 %v2487_v6 }
 0x487   :  { %2106 = vmatprep.subr.mxu1 %v2224_v15 }
 0x488   :  { %2107 = vmatpush3.msra.mxu1 %v2496_v7 }
 0x489   :  { %2108 = vmatprep.subr.mxu1 %v2224_v15 }
 0x48a   :  { %2109 = vmatpush3.msra.mxu1 %v2505_v8 }
 0x48b   :  { %2110 = vmatprep.subr.mxu1 %v2224_v15 }
 0x48c   :  { %2111 = vmatpush3.msra.mxu1 %v2514_v9 }
 0x50d   :  { %v2003_v57 = vpop.f32.mrf.mxu1 }
 0x50e   :  { %v1184_v6 = vadd.f32 %v2023_v59, %v2003_v57 }
 0x50f   :  { %v1078_v58 = vpop.f32.mrf.mxu1 }
 0x510   :  { %v1176_v3 = vadd.f32 %v1175_v61, %v1078_v58 }
 0x511   :  { %v2004_v60 = vpop.f32.mrf.mxu1 }
 0x512   :  { %v1187_v53 = vadd.f32 %v2024_v63, %v2004_v60 }
 0x513   :  { %v1081_v62 = vpop.f32.mrf.mxu1 }
 0x514   :  { %v1179_v7 = vadd.f32 %v1178_v4, %v1081_v62 }
 0x52d   :  { %v2043_v0 = vpop.f32.mrf.mxu1 }
 0x52e   :  { %v1306_v54 = vadd.f32 %v2043_v0, %v1184_v6 }
 0x52f   :  { %v1289_v2 = vpop.f32.mrf.mxu1 }
 0x530   :  { %v1304_v52 = vadd.f32 %v1289_v2, %v1176_v3  ;;  %v1319_v12 = vmul.f32 %v1306_v54, %v1306_v54 }
 0x531   :  { %v2044_v5 = vpop.f32.mrf.mxu1 }
 0x532   :  { %v1317_v9 = vmul.f32 %v1304_v52, %v1304_v52  ;;  %v1307_v26 = vadd.f32 %v2044_v5, %v1187_v53 }
 0x533   :  { %v1292_v8 = vpop.f32.mrf.mxu1 }
 0x534   :  { %v1305_v55 = vadd.f32 %v1292_v8, %v1179_v7  ;;  %v1320_v34 = vmul.f32 %v1307_v26, %v1307_v26 }
 0x536   :  { %v1308_v56 = vadd.f32 %v1305_v55, %v1304_v52  ;;  %v1318_v10 = vmul.f32 %v1305_v55, %v1305_v55 }
 0x538   :  { %v1309_v31 = vadd.f32 %v1308_v56, %v1306_v54  ;;  %v1321_v30 = vadd.f32 %v1318_v10, %v1317_v9 }
 0x53a   :  { %v1310_v13 = vadd.f32 %v1309_v31, %v1307_v26  ;;  %v1322_v14 = vadd.f32 %v1321_v30, %v1319_v12 }
 0x53c   :  { %v1311_v16 = vrot.slane %v1310_v13, 4  ;;  %v1323_v17 = vadd.f32 %v1322_v14, %v1320_v34 }
 0x53e   :  { %v1312_v18 = vadd.f32 %v1311_v16, %v1310_v13  ;;  %v1324_v19 = vrot.slane %v1323_v17, 4 }
 0x540   :  { %v1313_v20 = vrot.slane %v1312_v18, 2  ;;  %v1325_v29 = vadd.f32 %v1324_v19, %v1323_v17 }
 0x542   :  { %v1314_v36 = vadd.f32 %v1313_v20, %v1312_v18  ;;  %v1326_v21 = vrot.slane %v1325_v29, 2 }
 0x544   :  { %v1315_v22 = vrot.slane %v1314_v36, 1  ;;  %v1327_v24 = vadd.f32 %v1326_v21, %v1325_v29 }
 0x546   :  { %v1316_v25 = vadd.f32 %v1315_v22, %v1314_v36  ;;  %v1328_v27 = vrot.slane %v1327_v24, 1 }
 0x548   :  { %2078 = vmatmul.mubr.f32.vlgmr.msra.gmra.mxu0 %v1316_v25  ;;  %v1329_v28 = vadd.f32 %v1328_v27, %v1327_v24 }
 0x549   :  { %2116 = vmatpush3.bf16.msra.mxu0 %v2555_v11  ;;  %2117 = vmatprep.mubr.msk.bf16.mxu0 %vm2225_vm3, %v2224_v15 }
 0x54a   :  { %2113 = vmatmul.mubr.f32.vlgmr.msra.gmra.mxu1 %v1329_v28  ;;  %2121 = vmatprep.subr.bf16.mxu0 %v2224_v15 }
 0x608   :  { %v1396_v33 = vpop.f32.mrf.mxu0 }
 0x609   :  { %v1400_v35 = vmul.f32 0.001953125, %v1396_v33 }
 0x60a   :  { %v2079_v37 = vpop.f32.mrf.mxu0  ;;  %v1467_v38 = vpop.f32.mrf.mxu1 }
 0x60b   :  { %v1472_v40 = vmul.f32 %v1400_v35, %v1400_v35  ;;  %v1471_v41 = vmul.f32 0.001953125, %v1467_v38 }
 0x60c   :  { %v2114_v42 = vpop.f32.mrf.mxu1 }
 0x60d   :  { %v1473_v43 = vsub.f32 %v1471_v41, %v1472_v40 }
 0x60f   :  { %v1474_v44 = vmax.f32 %v1473_v43, 0.0 }
 0x611   :  { %v1476_v45 = vadd.f32 1e-05, %v1474_v44 }
 0x613   :  { %2175 = vrsqrt.f32 %v1476_v45 }
 0x620   :  { %v2176_v32 = vpop.eup %2175 }
 0x621   :  { %v1478_v47 = vmul.f32 %v2176_v32, %v1475_v46 }
 0x623   :  { %v1482_v48 = vpack.c.bf16 %v1478_v47, %v1478_v47  ;;  %v1480_v23 = vmul.f32 %v1478_v47, %v1400_v35 }
 0x625   :  { %2118 = vmatmul.mubr.msk.bf16.vlgmr.msra.gmra.mxu0 %vm747_vm5, %v1482_v48  ;;  %v1481_v1 = vsub.f32 %v1479_v49, %v1480_v23 }
 0x626   :  { %2122 = vmatpush3.bf16.msra.mxu0 %v2555_v11  ;;  %2123 = vmatprep.mubr.msk.bf16.mxu0 %vm2225_vm3, %v2224_v15 }
 0x627   :  { %v1526_v50 = vpack.c.bf16 %v1481_v1, %v1481_v1 }
 0x62d   :  { %2124 = vmatmul.mubr.msk.bf16.vlgmr.msra.gmra.mxu0 %vm747_vm5, %v1526_v50 }
 0x6e5   :  { %v1520_v51 = vpop.f32.mrf.mxu0 }
 0x6e6   :  { %v1573_v58 = vrot.slane %v1520_v51, %v2572_v39 }
 0x6e7   :  { %v2119_v57 = vpop.f32.mrf.mxu0 }
 0x6e8   :  { %v1574_v61 = vmul.f32 %v1573_v58, %v1304_v52  ;;  %v1575_v63 = vmul.f32 %v1573_v58, %v1305_v55  ;;  %v1576_v0 = vmul.f32 %v1573_v58, %v1306_v54  ;;  %v1577_v2 = vmul.f32 %v1573_v58, %v1307_v26 }
 0x6e9   :  { %v1523_v59 = vpop.f32.mrf.mxu0 }
 0x6eb   :  { %v2120_v60 = vpop.f32.mrf.mxu0 }
 0x6ed   :  { %v1564_v62 = vpop.f32.mrf.mxu0 }
 0x6ee   :  { %v1581_v11 = vrot.slane %v1564_v62, %v2572_v39 }
 0x6ef   :  { %v2125_v15 = vpop.f32.mrf.mxu0 }
 0x6f0   :  { %v1582_v3 = vadd.f32 %v1581_v11, %v1574_v61  ;;  %v1583_v4 = vadd.f32 %v1581_v11, %v1575_v63  ;;  %v1584_v5 = vadd.f32 %v1581_v11, %v1576_v0  ;;  %v1585_v6 = vadd.f32 %v1581_v11, %v1577_v2 }
 0x6f1   :  { %v1567_v7 = vpop.f32.mrf.mxu0 }
 0x6f2   :  { %v1586_v8 = vmax.f32 %v1582_v3, 0.0  ;;  %v1587_v53 = vmax.f32 %v1583_v4, 0.0  ;;  %v1588_v9 = vmax.f32 %v1584_v5, 0.0  ;;  %v1589_v56 = vmax.f32 %v1585_v6, 0.0 }
 0x6f3   :  { %v2126_v52 = vpop.f32.mrf.mxu0 }
 0x6f4   :  { %1590 = vst [vmem:[#allocation5] sm:$0xff] %v1586_v8  ;;  %1591 = vst [vmem:[#allocation5 + $0x8] sm:$0xff] %v1587_v53 }
 0x6f5   :  { %1592 = vst [vmem:[#allocation5 + $0x10] sm:$0xff] %v1588_v9  ;;  %1593 = vst [vmem:[#allocation5 + $0x18] sm:$0xff] %v1589_v56 }
 0x6f6   :  { %2208 = shalt.err (!%p2205_p9)
}
 0x6f7   :  { %s2227_s12 = smov 128   ;;  %s2228_s13 = smov 8  }
 0x6f8   :  { %1605 = dma.vmem_to_hbm [thread:$0]  %s1600_s6, 512, %s2682_s9, [#allocation4], %s2227_s12, %s2227_s12, %s2228_s13  }
 0x6f9   :  { %2219 = dma.done.wait [#allocation4], 512  }
 0x6fa   :  { %2220 = vsyncadd [#allocation4], 4294966784 }
 0x6fb   :  { %1609 = vsyncpa [#allocation3], 1 }
 0x6fc   :  { %1610 = vsyncpa [#allocation4], 1 }

</bundles_post_ra>
